<compile_context>
chip_gen: v7x
topology: tpu7x:2x2x1
jax: 0.10.0
libtpu: 0.0.40
codegen_flags: <defaults>
</compile_context>

<pallas_src>
import numpy as np
import jax
import jax.numpy as jnp
from jax import lax
from jax.experimental import pallas as pl
from jax.experimental.pallas import tpu as pltpu


# ----------------------------- Pallas kernel --------------------------------

def make_psalska_kernel(HWp, W, NB, c):
    """Kernel over a (NB, C, HWp) block: NB images, HWp = padded H*W lanes."""

    def kernel(x_ref,                       # (NB, C, HWp) bf16
               masks_ref,                   # (8, HWp) f32 boundary masks
               w1_ref,                      # (2c, C)  bf16  cv1 (BN folded)
               wdw_ref,                     # (c, 12)  f32   [w0h | w0v | wsh | wsv]
               wk1_ref,                     # (c, c)   bf16  LSKA 1x1
               wf1_ref, wf2_ref,            # (2c, c), (c, 2c)  bf16 FFN (BN folded)
               w2a_ref, w2b_ref,            # (C, c), (C, c)    bf16 cv2 split cols
               bc_ref,                      # (c, 6)  f32  [b0h,b0v,bsh,bsv,bk1,bf2]
               b2c_ref,                     # (2c, 2) f32  [b_cv1, b_ffn1]
               bC_ref,                      # (C, 1)  f32  b_cv2
               o_ref):                      # (NB, C, HWp) bf16
        # small loads hoisted once, shared by all NB images in this block
        masks = masks_ref[...]
        wdw = wdw_ref[...]
        bcv = bc_ref[...]
        b2cv = b2c_ref[...]
        bCv = bC_ref[...]

        def mm(w_ref, t):
            # bf16 operands, f32 accumulation -> native MXU rate
            return jnp.dot(w_ref[...], t.astype(jnp.bfloat16),
                           preferred_element_type=jnp.float32)

        def silu(t):
            # x * sigmoid(x); sigmoid via tanh -> EUP slot, no VPU divide
            return t * (0.5 * jnp.tanh(0.5 * t) + 0.5)

        def dwconv(t, wcol, bcol, offsets, mask_ids, lane_stride):
            # depthwise 3-tap conv along W (lane_stride=1) or H (lane_stride=W);
            # precomputed boundary masks kill the rotation wrap so taps never
            # leak across image edges or read the padded tail lanes.
            acc = None
            for j, off in enumerate(offsets):
                wt = wdw[:, wcol + j:wcol + j + 1]            # (c, 1) per-channel tap
                if off == 0:
                    term = wt * t
                else:
                    shift = off * lane_stride
                    src = pltpu.roll(t, shift=(-shift) % HWp, axis=1)  # out[p]=t[p+shift]
                    m = masks[mask_ids[j]:mask_ids[j] + 1, :]          # (1, HWp)
                    term = wt * (src * m)
                acc = term if acc is None else acc + term
            return acc + bcv[:, bcol:bcol + 1]

        for n in range(NB):                 # static unroll over the block's images
            x = x_ref[n]                                      # (C, HWp) bf16

            # cv1: one fused (2c, C) @ (C, HWp) matmul (BN folded) + SiLU
            y = silu(mm(w1_ref, x) + b2cv[:, 0:1])            # (2c, HWp) f32
            a = y[:c, :]
            b = y[c:, :]

            # LSKA(b), k_size=7: dw(1x3) -> dw(3x1) -> dw(1x3,d2) -> dw(3x1,d2) -> 1x1
            attn = dwconv(b,    0, 0, (-1, 0, 1), (0, None, 1), 1)
            attn = dwconv(attn, 3, 1, (-1, 0, 1), (2, None, 3), W)
            attn = dwconv(attn, 6, 2, (-2, 0, 2), (4, None, 5), 1)
            attn = dwconv(attn, 9, 3, (-2, 0, 2), (6, None, 7), W)
            attn = mm(wk1_ref, attn) + bcv[:, 4:5]
            b = b + b * attn                                  # b + LSKA(b)

            # FFN: 1x1 expand (BN folded + SiLU) + 1x1 project (BN folded), residual
            f = silu(mm(wf1_ref, b) + b2cv[:, 1:2])
            b = b + mm(wf2_ref, f) + bcv[:, 5:6]

            # cv2 on concat(a, b) == W2a @ a + W2b @ b, deferred to the end
            o_ref[n] = silu(mm(w2a_ref, a) + mm(w2b_ref, b) + bCv).astype(o_ref.dtype)

    return kernel


_WEIGHT_ORDER = ('w1', 'wdw', 'wk1', 'wf1', 'wf2', 'w2a', 'w2b', 'bc', 'b2c', 'bC')


def _boundary_masks(H, W, HWp):
    # f32 multiplier planes, one row per (offset, axis) pair used by LSKA k=7:
    #   0: col-1 valid  1: col+1 valid  2: row-1 valid  3: row+1 valid
    #   4: col-2 valid  5: col+2 valid  6: row-2 valid  7: row+2 valid
    pos = np.arange(HWp)
    col, row = pos % W, pos // W
    m = np.stack([col >= 1, col <= W - 2, row >= 1, row <= H - 2,
                  col >= 2, col <= W - 3, row >= 2, row <= H - 3], axis=0)
    return jnp.asarray(m.astype(np.float32))


def _tpu_generation_info():
    """(single_tensorcore, vmem_bytes), with conservative fallbacks."""
    kind = ""
    try:
        kind = jax.devices()[0].device_kind.lower()
    except Exception:
        pass
    single_tc = ("v5" in kind) or ("v6" in kind)     # 1 TC, 128 MiB VMEM
    try:
        vmem = int(pltpu.get_tpu_info().vmem_capacity_bytes)
    except Exception:
        vmem = (128 << 20) if single_tc else (64 << 20)
    return single_tc, vmem


def _pick_images_per_step(N, HWp, C, c, single_tc, vmem_bytes):
    # Live f32 temporaries per image ~ (2C + ~6c)*HWp*4, plus the double-buffered
    # bf16 in/out blocks (~8*C*HWp bytes total per image).
    per_image = (2 * C + 6 * max(c, 8)) * HWp * 4 + 8 * C * HWp * 2
    # v5e/v6e: single TC -> large blocks, no minimum number of grid steps.
    # v7x (and unknown): 2 TCs, 64 MiB VMEM -> keep >= 2 parallel grid steps.
    if single_tc:
        budget = min(vmem_bytes // 4, 24 << 20)
    else:
        budget = min(vmem_bytes // 8, 10 << 20)
    nb = max(1, min(N, budget // max(per_image, 1)))
    if (not single_tc) and N >= 2:
        nb = min(nb, (N + 1) // 2)
    return nb


def psalska_forward(x_nchw, kparams):
    N, C, H, W = x_nchw.shape
    HW = H * W
    HWp = ((HW + 127) // 128) * 128          # lane-pad each image to a 128 multiple
    c = kparams['wk1'].shape[0]

    # Flattened NCHW view; no batch/channel transposes.  Streamed I/O is bf16.
    xf = x_nchw.reshape(N, C, HW)
    if HWp != HW:
        # NOTE: padded tail lanes (pos >= H*W) carry don't-care values through
        # the kernel; the boundary masks guarantee they are never read into
        # valid lanes, and they are sliced off below.
        xf = jnp.pad(xf, ((0, 0), (0, 0), (0, HWp - HW)))
    xf = xf.astype(jnp.bfloat16)

    single_tc, vmem_bytes = _tpu_generation_info()
    NB = _pick_images_per_step(N, HWp, C, c, single_tc, vmem_bytes)
    Np = ((N + NB - 1) // NB) * NB           # pad the batch rather than shrinking NB
    if Np != N:
        xf = jnp.pad(xf, ((0, Np - N), (0, 0), (0, 0)))
    n_steps = Np // NB

    masks = _boundary_masks(H, W, HWp)
    weights = [kparams[k] for k in _WEIGHT_ORDER]
    kernel = make_psalska_kernel(HWp, W, NB, c)

    out = pl.pallas_call(
        kernel,
        out_shape=jax.ShapeDtypeStruct((Np, C, HWp), jnp.bfloat16),
        grid=(n_steps,),
        in_specs=[pl.BlockSpec((NB, C, HWp), lambda n: (n, 0, 0)),
                  pl.BlockSpec((8, HWp), lambda n: (0, 0))] +
                 [pl.BlockSpec(w.shape, lambda n: (0, 0)) for w in weights],
        out_specs=pl.BlockSpec((NB, C, HWp), lambda n: (n, 0, 0)),
        compiler_params=pltpu.CompilerParams(
            dimension_semantics=("parallel",),
            vmem_limit_bytes=(64 if single_tc else 32) * 1024 * 1024),
    )(xf, masks, *weights)

    return out[:N, :, :HW].reshape(N, C, H, W)


# ------------------------- parameter init & folding -------------------------

def init_raw_params(key, C, e=0.5):
    c = int(C * e)
    keys = iter(jax.random.split(key, 32))

    def w(shape, scale=0.25):
        return scale * jax.random.normal(next(keys), shape, dtype=jnp.float32)

    def bn(dim):
        return dict(
            gamma=1.0 + 0.1 * jax.random.normal(next(keys), (dim,), jnp.float32),
            beta=0.1 * jax.random.normal(next(keys), (dim,), jnp.float32),
            mean=0.1 * jax.random.normal(next(keys), (dim,), jnp.float32),
            var=0.5 + jax.random.uniform(next(keys), (dim,), dtype=jnp.float32),
        )

    return dict(
        cv1_w=w((2 * c, C, 1, 1)), cv1_bn=bn(2 * c),
        w0h=w((c, 1, 1, 3)), b0h=w((c,), 0.1),
        w0v=w((c, 1, 3, 1)), b0v=w((c,), 0.1),
        wsh=w((c, 1, 1, 3)), bsh=w((c,), 0.1),
        wsv=w((c, 1, 3, 1)), bsv=w((c,), 0.1),
        wk1=w((c, c, 1, 1)), bk1=w((c,), 0.1),
        ffn1_w=w((2 * c, c, 1, 1)), ffn1_bn=bn(2 * c),
        ffn2_w=w((c, 2 * c, 1, 1)), ffn2_bn=bn(c),
        cv2_w=w((C, 2 * c, 1, 1)), cv2_bn=bn(C),
    )


def _fold_bn(w2d, bnp, eps=1e-5):
    scale = bnp['gamma'] / jnp.sqrt(bnp['var'] + eps)
    return w2d * scale[:, None], bnp['beta'] - bnp['mean'] * scale


def make_kernel_params(raw, C, e=0.5):
    c = int(C * e)
    w1, b1 = _fold_bn(raw['cv1_w'].reshape(2 * c, C), raw['cv1_bn'])
    wf1, bf1 = _fold_bn(raw['ffn1_w'].reshape(2 * c, c), raw['ffn1_bn'])
    wf2, bf2 = _fold_bn(raw['ffn2_w'].reshape(c, 2 * c), raw['ffn2_bn'])
    w2, b2 = _fold_bn(raw['cv2_w'].reshape(C, 2 * c), raw['cv2_bn'])
    # pack the tiny depthwise tables / biases to cut per-step input count
    wdw = jnp.concatenate([raw['w0h'].reshape(c, 3), raw['w0v'].reshape(c, 3),
                           raw['wsh'].reshape(c, 3), raw['wsv'].reshape(c, 3)], axis=1)
    bc = jnp.stack([raw['b0h'], raw['b0v'], raw['bsh'], raw['bsv'],
                    raw['bk1'], bf2], axis=1)                 # (c, 6)
    b2c = jnp.stack([b1, bf1], axis=1)                        # (2c, 2)
    bf16 = lambda t: t.astype(jnp.bfloat16)   # MXU operands: bf16 in, f32 accumulate
    return dict(
        w1=bf16(w1), wdw=wdw, wk1=bf16(raw['wk1'].reshape(c, c)),
        wf1=bf16(wf1), wf2=bf16(wf2), w2a=bf16(w2[:, :c]), w2b=bf16(w2[:, c:]),
        bc=bc, b2c=b2c, bC=b2.reshape(C, 1),
    )


# ------------------------------ pure-JAX reference ---------------------------

def _conv2d(x, w, b=None, padding=(0, 0), dilation=(1, 1), groups=1):
    out = lax.conv_general_dilated(
        x, w, window_strides=(1, 1),
        padding=((padding[0], padding[0]), (padding[1], padding[1])),
        rhs_dilation=dilation,
        dimension_numbers=('NCHW', 'OIHW', 'NCHW'),
        feature_group_count=groups)
    if b is not None:
        out = out + b.reshape(1, -1, 1, 1)
    return out


def _bn_eval(x, bnp, eps=1e-5):
    g = bnp['gamma'].reshape(1, -1, 1, 1)
    bt = bnp['beta'].reshape(1, -1, 1, 1)
    m = bnp['mean'].reshape(1, -1, 1, 1)
    v = bnp['var'].reshape(1, -1, 1, 1)
    return (x - m) / jnp.sqrt(v + eps) * g + bt


def psalska_reference(x, raw, C, e=0.5):
    c = int(C * e)
    silu = jax.nn.silu
    t = silu(_bn_eval(_conv2d(x, raw['cv1_w']), raw['cv1_bn']))
    a, b = t[:, :c], t[:, c:]
    attn = _conv2d(b, raw['w0h'], raw['b0h'], padding=(0, 1), groups=c)
    attn = _conv2d(attn, raw['w0v'], raw['b0v'], padding=(1, 0), groups=c)
    attn = _conv2d(attn, raw['wsh'], raw['bsh'], padding=(0, 2), dilation=(2, 2), groups=c)
    attn = _conv2d(attn, raw['wsv'], raw['bsv'], padding=(2, 0), dilation=(2, 2), groups=c)
    attn = _conv2d(attn, raw['wk1'], raw['bk1'])
    b = b + b * attn
    f = silu(_bn_eval(_conv2d(b, raw['ffn1_w']), raw['ffn1_bn']))
    f = _bn_eval(_conv2d(f, raw['ffn2_w']), raw['ffn2_bn'])
    b = b + f
    cat = jnp.concatenate([a, b], axis=1)
    return silu(_bn_eval(_conv2d(cat, raw['cv2_w']), raw['cv2_bn']))


# ----------------------------------- main ------------------------------------

if __name__ == "__main__":
    N, C, H, W = 2, 16, 16, 16      # c1 == c2 == 16, hidden c = 8
    key = jax.random.PRNGKey(0)
    kx, kp = jax.random.split(key)
    x = jax.random.normal(kx, (N, C, H, W), dtype=jnp.float32)

    raw = init_raw_params(kp, C)
    kparams = make_kernel_params(raw, C)

    out = jax.block_until_ready(psalska_forward(x, kparams))
    ref = jax.block_until_ready(psalska_reference(x, raw, C))

    # bf16 matmul operands and bf16 streamed I/O (f32 accumulation) introduce
    # ~1e-2 level rounding through the 5-matmul chain; tolerance sized for that.
    out_f32 = np.asarray(out.astype(jnp.float32))
    np.testing.assert_allclose(out_f32, np.asarray(ref), atol=4e-2, rtol=4e-2)
    print("KERNEL_OK")
</pallas_src>

<mosaic_0001>
module attributes {stable_mosaic.version = 11 : i64} {
  func.func @kernel(%arg0: i32, %arg1: memref<1x16x256xbf16, #tpu.memory_space<vmem>>, %arg2: memref<8x256xf32, #tpu.memory_space<vmem>>, %arg3: memref<16x16xbf16, #tpu.memory_space<vmem>>, %arg4: memref<8x12xf32, #tpu.memory_space<vmem>>, %arg5: memref<8x8xbf16, #tpu.memory_space<vmem>>, %arg6: memref<16x8xbf16, #tpu.memory_space<vmem>>, %arg7: memref<8x16xbf16, #tpu.memory_space<vmem>>, %arg8: memref<16x8xbf16, #tpu.memory_space<vmem>>, %arg9: memref<16x8xbf16, #tpu.memory_space<vmem>>, %arg10: memref<8x6xf32, #tpu.memory_space<vmem>>, %arg11: memref<16x2xf32, #tpu.memory_space<vmem>>, %arg12: memref<16x1xf32, #tpu.memory_space<vmem>>, %arg13: memref<1x16x256xbf16, #tpu.memory_space<vmem>>) attributes {dimension_semantics = [#tpu.dimension_semantics<parallel>], iteration_bounds = array<i64: 2>, scalar_prefetch = 0 : i64, scratch_operands = 0 : i64, tpu.core_type = #tpu.core_type<tc>, window_params = [{transform_indices = @transform_0, window_bounds = array<i64: 1, 16, 256>}, {pipeline_mode = #tpu.pipeline_mode<synchronous>, transform_indices = @transform_1, window_bounds = array<i64: 8, 256>}, {pipeline_mode = #tpu.pipeline_mode<synchronous>, transform_indices = @transform_2, window_bounds = array<i64: 16, 16>}, {pipeline_mode = #tpu.pipeline_mode<synchronous>, transform_indices = @transform_3, window_bounds = array<i64: 8, 12>}, {pipeline_mode = #tpu.pipeline_mode<synchronous>, transform_indices = @transform_4, window_bounds = array<i64: 8, 8>}, {pipeline_mode = #tpu.pipeline_mode<synchronous>, transform_indices = @transform_5, window_bounds = array<i64: 16, 8>}, {pipeline_mode = #tpu.pipeline_mode<synchronous>, transform_indices = @transform_6, window_bounds = array<i64: 8, 16>}, {pipeline_mode = #tpu.pipeline_mode<synchronous>, transform_indices = @transform_7, window_bounds = array<i64: 16, 8>}, {pipeline_mode = #tpu.pipeline_mode<synchronous>, transform_indices = @transform_8, window_bounds = array<i64: 16, 8>}, {pipeline_mode = #tpu.pipeline_mode<synchronous>, transform_indices = @transform_9, window_bounds = array<i64: 8, 6>}, {pipeline_mode = #tpu.pipeline_mode<synchronous>, transform_indices = @transform_10, window_bounds = array<i64: 16, 2>}, {pipeline_mode = #tpu.pipeline_mode<synchronous>, transform_indices = @transform_11, window_bounds = array<i64: 16, 1>}, {transform_indices = @transform_12, window_bounds = array<i64: 1, 16, 256>}]} {
    %c0 = arith.constant 0 : index
    %c0_0 = arith.constant 0 : index
    %0 = vector.load %arg2[%c0, %c0_0] : memref<8x256xf32, #tpu.memory_space<vmem>>, vector<8x256xf32>
    %c0_1 = arith.constant 0 : index
    %c0_2 = arith.constant 0 : index
    %1 = vector.load %arg4[%c0_1, %c0_2] : memref<8x12xf32, #tpu.memory_space<vmem>>, vector<8x12xf32>
    %c0_3 = arith.constant 0 : index
    %c0_4 = arith.constant 0 : index
    %2 = vector.load %arg10[%c0_3, %c0_4] : memref<8x6xf32, #tpu.memory_space<vmem>>, vector<8x6xf32>
    %c0_5 = arith.constant 0 : index
    %c0_6 = arith.constant 0 : index
    %3 = vector.load %arg11[%c0_5, %c0_6] : memref<16x2xf32, #tpu.memory_space<vmem>>, vector<16x2xf32>
    %c0_7 = arith.constant 0 : index
    %c0_8 = arith.constant 0 : index
    %4 = vector.load %arg12[%c0_7, %c0_8] : memref<16x1xf32, #tpu.memory_space<vmem>>, vector<16x1xf32>
    %c0_9 = arith.constant 0 : index
    %c0_10 = arith.constant 0 : index
    %c0_11 = arith.constant 0 : index
    %5 = vector.load %arg1[%c0_9, %c0_10, %c0_11] : memref<1x16x256xbf16, #tpu.memory_space<vmem>>, vector<1x16x256xbf16>
    %6 = vector.shape_cast %5 : vector<1x16x256xbf16> to vector<16x256xbf16>
    %c0_12 = arith.constant 0 : index
    %c0_13 = arith.constant 0 : index
    %7 = vector.load %arg3[%c0_12, %c0_13] : memref<16x16xbf16, #tpu.memory_space<vmem>>, vector<16x16xbf16>
    %cst = arith.constant dense<0.000000e+00> : vector<16x256xf32>
    %8 = tpu.matmul %7, %6, %cst {dimension_numbers = #tpu.dot_dimension_numbers<[1], [0], [0], [1], [0, 0, 1, 1], [], []>} : vector<16x16xbf16>, vector<16x256xbf16>, vector<16x256xf32> -> vector<16x256xf32>
    %9 = vector.extract_strided_slice %3 {offsets = [0, 0], sizes = [16, 1], strides = [1, 1]} : vector<16x2xf32> to vector<16x1xf32>
    %10 = vector.broadcast %9 : vector<16x1xf32> to vector<16x256xf32>
    %11 = arith.addf %8, %10 : vector<16x256xf32>
    %cst_14 = arith.constant 5.000000e-01 : f32
    %12 = vector.broadcast %cst_14 : f32 to vector<16x256xf32>
    %13 = arith.mulf %12, %11 : vector<16x256xf32>
    %14 = math.tanh %13 : vector<16x256xf32>
    %cst_15 = arith.constant 5.000000e-01 : f32
    %15 = vector.broadcast %cst_15 : f32 to vector<16x256xf32>
    %16 = arith.mulf %15, %14 : vector<16x256xf32>
    %cst_16 = arith.constant 5.000000e-01 : f32
    %17 = vector.broadcast %cst_16 : f32 to vector<16x256xf32>
    %18 = arith.addf %16, %17 : vector<16x256xf32>
    %19 = arith.mulf %11, %18 : vector<16x256xf32>
    %20 = vector.extract_strided_slice %19 {offsets = [0, 0], sizes = [8, 256], strides = [1, 1]} : vector<16x256xf32> to vector<8x256xf32>
    %21 = vector.extract_strided_slice %19 {offsets = [8, 0], sizes = [8, 256], strides = [1, 1]} : vector<16x256xf32> to vector<8x256xf32>
    %22 = vector.extract_strided_slice %1 {offsets = [0, 0], sizes = [8, 1], strides = [1, 1]} : vector<8x12xf32> to vector<8x1xf32>
    %c1_i32 = arith.constant 1 : i32
    %23 = tpu.dynamic_rotate %21 by %c1_i32 dim 1 : vector<8x256xf32>, i32 -> vector<8x256xf32>
    %24 = vector.extract_strided_slice %0 {offsets = [0, 0], sizes = [1, 256], strides = [1, 1]} : vector<8x256xf32> to vector<1x256xf32>
    %25 = vector.broadcast %24 : vector<1x256xf32> to vector<8x256xf32>
    %26 = arith.mulf %23, %25 : vector<8x256xf32>
    %27 = vector.broadcast %22 : vector<8x1xf32> to vector<8x256xf32>
    %28 = arith.mulf %27, %26 : vector<8x256xf32>
    %29 = vector.extract_strided_slice %1 {offsets = [0, 1], sizes = [8, 1], strides = [1, 1]} : vector<8x12xf32> to vector<8x1xf32>
    %30 = vector.broadcast %29 : vector<8x1xf32> to vector<8x256xf32>
    %31 = arith.mulf %30, %21 : vector<8x256xf32>
    %32 = arith.addf %28, %31 : vector<8x256xf32>
    %33 = vector.extract_strided_slice %1 {offsets = [0, 2], sizes = [8, 1], strides = [1, 1]} : vector<8x12xf32> to vector<8x1xf32>
    %c255_i32 = arith.constant 255 : i32
    %34 = tpu.dynamic_rotate %21 by %c255_i32 dim 1 : vector<8x256xf32>, i32 -> vector<8x256xf32>
    %35 = vector.extract_strided_slice %0 {offsets = [1, 0], sizes = [1, 256], strides = [1, 1]} : vector<8x256xf32> to vector<1x256xf32>
    %36 = vector.broadcast %35 : vector<1x256xf32> to vector<8x256xf32>
    %37 = arith.mulf %34, %36 : vector<8x256xf32>
    %38 = vector.broadcast %33 : vector<8x1xf32> to vector<8x256xf32>
    %39 = arith.mulf %38, %37 : vector<8x256xf32>
    %40 = arith.addf %32, %39 : vector<8x256xf32>
    %41 = vector.extract_strided_slice %2 {offsets = [0, 0], sizes = [8, 1], strides = [1, 1]} : vector<8x6xf32> to vector<8x1xf32>
    %42 = vector.broadcast %41 : vector<8x1xf32> to vector<8x256xf32>
    %43 = arith.addf %40, %42 : vector<8x256xf32>
    %44 = vector.extract_strided_slice %1 {offsets = [0, 3], sizes = [8, 1], strides = [1, 1]} : vector<8x12xf32> to vector<8x1xf32>
    %c16_i32 = arith.constant 16 : i32
    %45 = tpu.dynamic_rotate %43 by %c16_i32 dim 1 : vector<8x256xf32>, i32 -> vector<8x256xf32>
    %46 = vector.extract_strided_slice %0 {offsets = [2, 0], sizes = [1, 256], strides = [1, 1]} : vector<8x256xf32> to vector<1x256xf32>
    %47 = vector.broadcast %46 : vector<1x256xf32> to vector<8x256xf32>
    %48 = arith.mulf %45, %47 : vector<8x256xf32>
    %49 = vector.broadcast %44 : vector<8x1xf32> to vector<8x256xf32>
    %50 = arith.mulf %49, %48 : vector<8x256xf32>
    %51 = vector.extract_strided_slice %1 {offsets = [0, 4], sizes = [8, 1], strides = [1, 1]} : vector<8x12xf32> to vector<8x1xf32>
    %52 = vector.broadcast %51 : vector<8x1xf32> to vector<8x256xf32>
    %53 = arith.mulf %52, %43 : vector<8x256xf32>
    %54 = arith.addf %50, %53 : vector<8x256xf32>
    %55 = vector.extract_strided_slice %1 {offsets = [0, 5], sizes = [8, 1], strides = [1, 1]} : vector<8x12xf32> to vector<8x1xf32>
    %c240_i32 = arith.constant 240 : i32
    %56 = tpu.dynamic_rotate %43 by %c240_i32 dim 1 : vector<8x256xf32>, i32 -> vector<8x256xf32>
    %57 = vector.extract_strided_slice %0 {offsets = [3, 0], sizes = [1, 256], strides = [1, 1]} : vector<8x256xf32> to vector<1x256xf32>
    %58 = vector.broadcast %57 : vector<1x256xf32> to vector<8x256xf32>
    %59 = arith.mulf %56, %58 : vector<8x256xf32>
    %60 = vector.broadcast %55 : vector<8x1xf32> to vector<8x256xf32>
    %61 = arith.mulf %60, %59 : vector<8x256xf32>
    %62 = arith.addf %54, %61 : vector<8x256xf32>
    %63 = vector.extract_strided_slice %2 {offsets = [0, 1], sizes = [8, 1], strides = [1, 1]} : vector<8x6xf32> to vector<8x1xf32>
    %64 = vector.broadcast %63 : vector<8x1xf32> to vector<8x256xf32>
    %65 = arith.addf %62, %64 : vector<8x256xf32>
    %66 = vector.extract_strided_slice %1 {offsets = [0, 6], sizes = [8, 1], strides = [1, 1]} : vector<8x12xf32> to vector<8x1xf32>
    %c2_i32 = arith.constant 2 : i32
    %67 = tpu.dynamic_rotate %65 by %c2_i32 dim 1 : vector<8x256xf32>, i32 -> vector<8x256xf32>
    %68 = vector.extract_strided_slice %0 {offsets = [4, 0], sizes = [1, 256], strides = [1, 1]} : vector<8x256xf32> to vector<1x256xf32>
    %69 = vector.broadcast %68 : vector<1x256xf32> to vector<8x256xf32>
    %70 = arith.mulf %67, %69 : vector<8x256xf32>
    %71 = vector.broadcast %66 : vector<8x1xf32> to vector<8x256xf32>
    %72 = arith.mulf %71, %70 : vector<8x256xf32>
    %73 = vector.extract_strided_slice %1 {offsets = [0, 7], sizes = [8, 1], strides = [1, 1]} : vector<8x12xf32> to vector<8x1xf32>
    %74 = vector.broadcast %73 : vector<8x1xf32> to vector<8x256xf32>
    %75 = arith.mulf %74, %65 : vector<8x256xf32>
    %76 = arith.addf %72, %75 : vector<8x256xf32>
    %77 = vector.extract_strided_slice %1 {offsets = [0, 8], sizes = [8, 1], strides = [1, 1]} : vector<8x12xf32> to vector<8x1xf32>
    %c254_i32 = arith.constant 254 : i32
    %78 = tpu.dynamic_rotate %65 by %c254_i32 dim 1 : vector<8x256xf32>, i32 -> vector<8x256xf32>
    %79 = vector.extract_strided_slice %0 {offsets = [5, 0], sizes = [1, 256], strides = [1, 1]} : vector<8x256xf32> to vector<1x256xf32>
    %80 = vector.broadcast %79 : vector<1x256xf32> to vector<8x256xf32>
    %81 = arith.mulf %78, %80 : vector<8x256xf32>
    %82 = vector.broadcast %77 : vector<8x1xf32> to vector<8x256xf32>
    %83 = arith.mulf %82, %81 : vector<8x256xf32>
    %84 = arith.addf %76, %83 : vector<8x256xf32>
    %85 = vector.extract_strided_slice %2 {offsets = [0, 2], sizes = [8, 1], strides = [1, 1]} : vector<8x6xf32> to vector<8x1xf32>
    %86 = vector.broadcast %85 : vector<8x1xf32> to vector<8x256xf32>
    %87 = arith.addf %84, %86 : vector<8x256xf32>
    %88 = vector.extract_strided_slice %1 {offsets = [0, 9], sizes = [8, 1], strides = [1, 1]} : vector<8x12xf32> to vector<8x1xf32>
    %c32_i32 = arith.constant 32 : i32
    %89 = tpu.dynamic_rotate %87 by %c32_i32 dim 1 : vector<8x256xf32>, i32 -> vector<8x256xf32>
    %90 = vector.extract_strided_slice %0 {offsets = [6, 0], sizes = [1, 256], strides = [1, 1]} : vector<8x256xf32> to vector<1x256xf32>
    %91 = vector.broadcast %90 : vector<1x256xf32> to vector<8x256xf32>
    %92 = arith.mulf %89, %91 : vector<8x256xf32>
    %93 = vector.broadcast %88 : vector<8x1xf32> to vector<8x256xf32>
    %94 = arith.mulf %93, %92 : vector<8x256xf32>
    %95 = vector.extract_strided_slice %1 {offsets = [0, 10], sizes = [8, 1], strides = [1, 1]} : vector<8x12xf32> to vector<8x1xf32>
    %96 = vector.broadcast %95 : vector<8x1xf32> to vector<8x256xf32>
    %97 = arith.mulf %96, %87 : vector<8x256xf32>
    %98 = arith.addf %94, %97 : vector<8x256xf32>
    %99 = vector.extract_strided_slice %1 {offsets = [0, 11], sizes = [8, 1], strides = [1, 1]} : vector<8x12xf32> to vector<8x1xf32>
    %c224_i32 = arith.constant 224 : i32
    %100 = tpu.dynamic_rotate %87 by %c224_i32 dim 1 : vector<8x256xf32>, i32 -> vector<8x256xf32>
    %101 = vector.extract_strided_slice %0 {offsets = [7, 0], sizes = [1, 256], strides = [1, 1]} : vector<8x256xf32> to vector<1x256xf32>
    %102 = vector.broadcast %101 : vector<1x256xf32> to vector<8x256xf32>
    %103 = arith.mulf %100, %102 : vector<8x256xf32>
    %104 = vector.broadcast %99 : vector<8x1xf32> to vector<8x256xf32>
    %105 = arith.mulf %104, %103 : vector<8x256xf32>
    %106 = arith.addf %98, %105 : vector<8x256xf32>
    %107 = vector.extract_strided_slice %2 {offsets = [0, 3], sizes = [8, 1], strides = [1, 1]} : vector<8x6xf32> to vector<8x1xf32>
    %108 = vector.broadcast %107 : vector<8x1xf32> to vector<8x256xf32>
    %109 = arith.addf %106, %108 : vector<8x256xf32>
    %c0_17 = arith.constant 0 : index
    %c0_18 = arith.constant 0 : index
    %110 = vector.load %arg5[%c0_17, %c0_18] : memref<8x8xbf16, #tpu.memory_space<vmem>>, vector<8x8xbf16>
    %111 = arith.truncf %109 : vector<8x256xf32> to vector<8x256xbf16>
    %cst_19 = arith.constant dense<0.000000e+00> : vector<8x256xf32>
    %112 = tpu.matmul %110, %111, %cst_19 {dimension_numbers = #tpu.dot_dimension_numbers<[1], [0], [0], [1], [0, 0, 1, 1], [], []>} : vector<8x8xbf16>, vector<8x256xbf16>, vector<8x256xf32> -> vector<8x256xf32>
    %113 = vector.extract_strided_slice %2 {offsets = [0, 4], sizes = [8, 1], strides = [1, 1]} : vector<8x6xf32> to vector<8x1xf32>
    %114 = vector.broadcast %113 : vector<8x1xf32> to vector<8x256xf32>
    %115 = arith.addf %112, %114 : vector<8x256xf32>
    %116 = arith.mulf %21, %115 : vector<8x256xf32>
    %117 = arith.addf %21, %116 : vector<8x256xf32>
    %c0_20 = arith.constant 0 : index
    %c0_21 = arith.constant 0 : index
    %118 = vector.load %arg6[%c0_20, %c0_21] : memref<16x8xbf16, #tpu.memory_space<vmem>>, vector<16x8xbf16>
    %119 = arith.truncf %117 : vector<8x256xf32> to vector<8x256xbf16>
    %cst_22 = arith.constant dense<0.000000e+00> : vector<16x256xf32>
    %120 = tpu.matmul %118, %119, %cst_22 {dimension_numbers = #tpu.dot_dimension_numbers<[1], [0], [0], [1], [0, 0, 1, 1], [], []>} : vector<16x8xbf16>, vector<8x256xbf16>, vector<16x256xf32> -> vector<16x256xf32>
    %121 = vector.extract_strided_slice %3 {offsets = [0, 1], sizes = [16, 1], strides = [1, 1]} : vector<16x2xf32> to vector<16x1xf32>
    %122 = vector.broadcast %121 : vector<16x1xf32> to vector<16x256xf32>
    %123 = arith.addf %120, %122 : vector<16x256xf32>
    %cst_23 = arith.constant 5.000000e-01 : f32
    %124 = vector.broadcast %cst_23 : f32 to vector<16x256xf32>
    %125 = arith.mulf %124, %123 : vector<16x256xf32>
    %126 = math.tanh %125 : vector<16x256xf32>
    %cst_24 = arith.constant 5.000000e-01 : f32
    %127 = vector.broadcast %cst_24 : f32 to vector<16x256xf32>
    %128 = arith.mulf %127, %126 : vector<16x256xf32>
    %cst_25 = arith.constant 5.000000e-01 : f32
    %129 = vector.broadcast %cst_25 : f32 to vector<16x256xf32>
    %130 = arith.addf %128, %129 : vector<16x256xf32>
    %131 = arith.mulf %123, %130 : vector<16x256xf32>
    %c0_26 = arith.constant 0 : index
    %c0_27 = arith.constant 0 : index
    %132 = vector.load %arg7[%c0_26, %c0_27] : memref<8x16xbf16, #tpu.memory_space<vmem>>, vector<8x16xbf16>
    %133 = arith.truncf %131 : vector<16x256xf32> to vector<16x256xbf16>
    %cst_28 = arith.constant dense<0.000000e+00> : vector<8x256xf32>
    %134 = tpu.matmul %132, %133, %cst_28 {dimension_numbers = #tpu.dot_dimension_numbers<[1], [0], [0], [1], [0, 0, 1, 1], [], []>} : vector<8x16xbf16>, vector<16x256xbf16>, vector<8x256xf32> -> vector<8x256xf32>
    %135 = arith.addf %117, %134 : vector<8x256xf32>
    %136 = vector.extract_strided_slice %2 {offsets = [0, 5], sizes = [8, 1], strides = [1, 1]} : vector<8x6xf32> to vector<8x1xf32>
    %137 = vector.broadcast %136 : vector<8x1xf32> to vector<8x256xf32>
    %138 = arith.addf %135, %137 : vector<8x256xf32>
    %c0_29 = arith.constant 0 : index
    %c0_30 = arith.constant 0 : index
    %139 = vector.load %arg8[%c0_29, %c0_30] : memref<16x8xbf16, #tpu.memory_space<vmem>>, vector<16x8xbf16>
    %140 = arith.truncf %20 : vector<8x256xf32> to vector<8x256xbf16>
    %cst_31 = arith.constant dense<0.000000e+00> : vector<16x256xf32>
    %141 = tpu.matmul %139, %140, %cst_31 {dimension_numbers = #tpu.dot_dimension_numbers<[1], [0], [0], [1], [0, 0, 1, 1], [], []>} : vector<16x8xbf16>, vector<8x256xbf16>, vector<16x256xf32> -> vector<16x256xf32>
    %c0_32 = arith.constant 0 : index
    %c0_33 = arith.constant 0 : index
    %142 = vector.load %arg9[%c0_32, %c0_33] : memref<16x8xbf16, #tpu.memory_space<vmem>>, vector<16x8xbf16>
    %143 = arith.truncf %138 : vector<8x256xf32> to vector<8x256xbf16>
    %cst_34 = arith.constant dense<0.000000e+00> : vector<16x256xf32>
    %144 = tpu.matmul %142, %143, %cst_34 {dimension_numbers = #tpu.dot_dimension_numbers<[1], [0], [0], [1], [0, 0, 1, 1], [], []>} : vector<16x8xbf16>, vector<8x256xbf16>, vector<16x256xf32> -> vector<16x256xf32>
    %145 = arith.addf %141, %144 : vector<16x256xf32>
    %146 = vector.broadcast %4 : vector<16x1xf32> to vector<16x256xf32>
    %147 = arith.addf %145, %146 : vector<16x256xf32>
    %cst_35 = arith.constant 5.000000e-01 : f32
    %148 = vector.broadcast %cst_35 : f32 to vector<16x256xf32>
    %149 = arith.mulf %148, %147 : vector<16x256xf32>
    %150 = math.tanh %149 : vector<16x256xf32>
    %cst_36 = arith.constant 5.000000e-01 : f32
    %151 = vector.broadcast %cst_36 : f32 to vector<16x256xf32>
    %152 = arith.mulf %151, %150 : vector<16x256xf32>
    %cst_37 = arith.constant 5.000000e-01 : f32
    %153 = vector.broadcast %cst_37 : f32 to vector<16x256xf32>
    %154 = arith.addf %152, %153 : vector<16x256xf32>
    %155 = arith.mulf %147, %154 : vector<16x256xf32>
    %156 = arith.truncf %155 : vector<16x256xf32> to vector<16x256xbf16>
    %c0_38 = arith.constant 0 : index
    %c0_39 = arith.constant 0 : index
    %c0_40 = arith.constant 0 : index
    %157 = vector.load %arg13[%c0_38, %c0_39, %c0_40] : memref<1x16x256xbf16, #tpu.memory_space<vmem>>, vector<1x16x256xbf16>
    %158 = vector.shape_cast %157 : vector<1x16x256xbf16> to vector<16x256xbf16>
    %159 = vector.shape_cast %156 : vector<16x256xbf16> to vector<1x16x256xbf16>
    tpu.vector_store %arg13[%c0_38, %c0_39, %c0_40], %159 {strides = array<i32>} : memref<1x16x256xbf16, #tpu.memory_space<vmem>>, vector<1x16x256xbf16>,
    return
  }
  func.func @transform_0(%arg0: i32) -> (i32, i32, i32) {
    %c0_i32 = arith.constant 0 : i32
    %c0_i32_0 = arith.constant 0 : i32
    %c0_i32_1 = arith.constant 0 : i32
    return %arg0, %c0_i32, %c0_i32_0 : i32, i32, i32
  }
  func.func @transform_1(%arg0: i32) -> (i32, i32) {
    %c0_i32 = arith.constant 0 : i32
    %c0_i32_0 = arith.constant 0 : i32
    %c0_i32_1 = arith.constant 0 : i32
    return %c0_i32, %c0_i32_0 : i32, i32
  }
  func.func @transform_2(%arg0: i32) -> (i32, i32) {
    %c0_i32 = arith.constant 0 : i32
    %c0_i32_0 = arith.constant 0 : i32
    %c0_i32_1 = arith.constant 0 : i32
    return %c0_i32, %c0_i32_0 : i32, i32
  }
  func.func @transform_3(%arg0: i32) -> (i32, i32) {
    %c0_i32 = arith.constant 0 : i32
    %c0_i32_0 = arith.constant 0 : i32
    %c0_i32_1 = arith.constant 0 : i32
    return %c0_i32, %c0_i32_0 : i32, i32
  }
  func.func @transform_4(%arg0: i32) -> (i32, i32) {
    %c0_i32 = arith.constant 0 : i32
    %c0_i32_0 = arith.constant 0 : i32
    %c0_i32_1 = arith.constant 0 : i32
    return %c0_i32, %c0_i32_0 : i32, i32
  }
  func.func @transform_5(%arg0: i32) -> (i32, i32) {
    %c0_i32 = arith.constant 0 : i32
    %c0_i32_0 = arith.constant 0 : i32
    %c0_i32_1 = arith.constant 0 : i32
    return %c0_i32, %c0_i32_0 : i32, i32
  }
  func.func @transform_6(%arg0: i32) -> (i32, i32) {
    %c0_i32 = arith.constant 0 : i32
    %c0_i32_0 = arith.constant 0 : i32
    %c0_i32_1 = arith.constant 0 : i32
    return %c0_i32, %c0_i32_0 : i32, i32
  }
  func.func @transform_7(%arg0: i32) -> (i32, i32) {
    %c0_i32 = arith.constant 0 : i32
    %c0_i32_0 = arith.constant 0 : i32
    %c0_i32_1 = arith.constant 0 : i32
    return %c0_i32, %c0_i32_0 : i32, i32
  }
  func.func @transform_8(%arg0: i32) -> (i32, i32) {
    %c0_i32 = arith.constant 0 : i32
    %c0_i32_0 = arith.constant 0 : i32
    %c0_i32_1 = arith.constant 0 : i32
    return %c0_i32, %c0_i32_0 : i32, i32
  }
  func.func @transform_9(%arg0: i32) -> (i32, i32) {
    %c0_i32 = arith.constant 0 : i32
    %c0_i32_0 = arith.constant 0 : i32
    %c0_i32_1 = arith.constant 0 : i32
    return %c0_i32, %c0_i32_0 : i32, i32
  }
  func.func @transform_10(%arg0: i32) -> (i32, i32) {
    %c0_i32 = arith.constant 0 : i32
    %c0_i32_0 = arith.constant 0 : i32
    %c0_i32_1 = arith.constant 0 : i32
    return %c0_i32, %c0_i32_0 : i32, i32
  }
  func.func @transform_11(%arg0: i32) -> (i32, i32) {
    %c0_i32 = arith.constant 0 : i32
    %c0_i32_0 = arith.constant 0 : i32
    %c0_i32_1 = arith.constant 0 : i32
    return %c0_i32, %c0_i32_0 : i32, i32
  }
  func.func @transform_12(%arg0: i32) -> (i32, i32, i32) {
    %c0_i32 = arith.constant 0 : i32
    %c0_i32_0 = arith.constant 0 : i32
    %c0_i32_1 = arith.constant 0 : i32
    return %arg0, %c0_i32, %c0_i32_0 : i32, i32, i32
  }
}

</mosaic_0001>

<bundles_post_ra>
// kernel: tpu_custom_call.1
= control target key start
LH: loop header
LB: loop body
LE: loop exit
PB: predicated region body
PF: predicated region fallthrough
CT: control target
= control target key end

     0   :  { %17 = vsyncpa [#allocation3], 0  ;;  %s1906_s0 = inlined_call_operand.vmem [shape: bf16[2,16,256], index: 0, kind: input, shape index: {}]   ;;  %s1907_s1 = inlined_call_operand.vmem [shape: f32[8,256], index: 1, kind: input, shape index: {}]   ;;  %s1908_s2 = inlined_call_operand.vmem [shape: bf16[16,16], index: 2, kind: input, shape index: {}]   ;;  %s1909_s3 = inlined_call_operand.vmem [shape: f32[8,12], index: 3, kind: input, shape index: {}]   ;;  %s1910_s4 = inlined_call_operand.hbm [shape: bf16[8,8], index: 4, kind: input, shape index: {}]   ;;  %s1911_s5 = inlined_call_operand.vmem [shape: bf16[16,8], index: 5, kind: input, shape index: {}]   ;;  %s1912_s6 = inlined_call_operand.vmem [shape: bf16[8,16], index: 6, kind: input, shape index: {}]   ;;  %s1913_s7 = inlined_call_operand.vmem [shape: bf16[16,8], index: 7, kind: input, shape index: {}]   ;;  %s1914_s8 = inlined_call_operand.vmem [shape: bf16[16,8], index: 8, kind: input, shape index: {}]   ;;  %s1915_s9 = inlined_call_operand.vmem [shape: f32[8,6], index: 9, kind: input, shape index: {}]   ;;  %s1916_s10 = inlined_call_operand.vmem [shape: f32[16,2], index: 10, kind: input, shape index: {}]   ;;  %s1917_s11 = inlined_call_operand.vmem [shape: f32[16,1], index: 11, kind: input, shape index: {}]   ;;  %s1918_s12 = inlined_call_operand.hbm [shape: bf16[2,16,256], index: 12, kind: output, shape index: {}]  }
   0x1   :  { %18 = vsyncpa [#allocation4], 0 }
   0x2   :  { %20 = vsyncpa [#allocation4 + $0x1], 0  ;;  %s1597_s21 = smov 0   ;;  %s1599_s22 = smov 0  }
   0x3   :  { %s1601_s23 = smov 0   ;;  %s1603_s24 = smov 0  }
   0x4 LB: > { %1923 = sst [smem:[#allocation8_spill]] %s1502_s23  ;;  %s1618_s25 = sadd.s32 4294967295, %s1506_s24   ;;  %s1506_s24 = sphi %s1603_s24, %s1938_s24   ;;  %s1502_s23 = sphi %s1601_s23, %s1935_s23   ;;  %s1498_s22 = sphi %s1599_s22, %s1937_s22   ;;  %s1494_s21 = sphi %s1597_s21, %s1936_s21  }
   0x5   : > { %s1247_s26 = sadd.s32 4294967294, %s1506_s24   ;;  %s1622_s27 = sadd.s32 1, %s1506_s24  }
   0x6   : > { %s290_s28 = sadd.s32 1, %s1502_s23  ;;  %s287_s29 = ssub.s32 %s1506_s24, %s1622_s27 }
   0x7   : > { %p300_p0 = scmp.ne.s32.totalorder %s1502_s23, %s1498_s22  ;;  %p288_p1 = scmp.eq.s32.totalorder %s287_s29, 0 }
   0x8   : > { %p301_p2 = scmp.eq.s32.totalorder %s1618_s25, 1  ;;  %p306_p3 = scmp.ne.s32.totalorder %s1498_s22, %s1494_s21 }
   0x9   : > { %p307_p4 = scmp.eq.s32.totalorder %s1247_s26, 1  ;;  %p1248_p7 = scmp.ge.s32.totalorder %s1506_s24, 1 }
   0xa   : > { %s1633_s30 = scalar_select %p288_p1, %s1502_s23, %s290_s28  }
   0xb   : > { %p1635_p5 = por %p301_p2, %p300_p0  ;;  %p1639_p6 = por %p307_p4, %p306_p3 }
   0xc   : > { %1924 = sst [smem:[#allocation9_spill]] %s1633_s30  ;;  %p314_p8 = scmp.lt.s32.totalorder %s1506_s24, 3 }
   0xd   : > { %s1925_s13 = scalar_select %p1635_p5, 1, 0 }
   0xe   : > { %s1926_s14 = scalar_select %p1639_p6, 1, 0 }
   0xf   : > { %p1920_p9 = scmp.eq.s32.totalorder %s1618_s25, 0  ;;  %p1646_p10 = pnand %p1248_p7, %p314_p8 }
  0x10   : > { %s1508_s16 = smov [#allocation2]   ;;  %s1412_s26 = scalar_lea.hbm %s1910_s4, 64 }
  0x11   : > { %s1927_s15 = scalar_select %p1646_p10, 1, 0 }
  0x12   : > { %s336_s17 = sshll.u32 %s1508_s16, 4  ;;  %p1293_p11 = pneg %p1646_p10  ;;  %s337_s17 = int_to_ptr.vmem [resolvable:$true] %s336_s17 }
  0x13   : > { %p1413_p13 = scmp.ne.s32.totalorder %s1910_s4, %s1412_s26  ;;  %p1419_p3 = scmp.lt.u32.totalorder %s1412_s26, %s1910_s4 }
  0x14   : > { %p1654_p12 = pnand %p1920_p9, %p1293_p11 }
  0x16   : > { %p1414_p0 = pneg %p1654_p12 }
  0x18   : > { %p1415_p1 = pnand %p1414_p0, %p1413_p13 }
  0x1a   : > { %p1416_p2 = pneg %p1415_p1 }
  0x1c   : > { %p1421_p4 = pnand %p1419_p3, %p1416_p2 }
  0x1e   : > { %1424 = shalt.err (!%p1421_p4)
}
  0x1f   : > { %s1425_s23 = scalar_lea.vmem %s337_s17, 64  ;;  %p1433_p9 = scmp.lt.s32.totalorder %s337_s17, %s337_s17 }
  0x20   : > { %p1426_p7 = scmp.ne.s32.totalorder %s337_s17, %s1425_s23  ;;  %p1434_p6 = scmp.lt.s32.totalorder %s1425_s23, %s1425_s23 }
  0x22   : > { %p1428_p8 = pnand %p1426_p7, %p1414_p0  ;;  %p1435_p5 = por %p1434_p6, %p1433_p9 }
  0x24   : > { %p1429_p11 = pneg %p1428_p8 }
  0x26   : > { %p1436_p10 = pnand %p1435_p5, %p1429_p11 }
  0x28   : > { %1439 = shalt.err (!%p1436_p10)
}
  0x29   : > { %1296 = dma.hbm_to_vmem [thread:$0]  (!%p1654_p12), %s1910_s4, 64, %s337_s17, [#allocation3]  }
  0x2a   : > { %p1929_p13 = scmp.ne.s32.totalorder %s1927_s15, 0 }
  0x2b   : > { %p1930_p1 = scmp.eq.s32.totalorder (!%p1929_p13), %s1618_s25, 0 }
  0x2c   : > { %378 = sbr.rel (%p1929_p13) target bundleno = 1807 (0x70f), region = 68 }
  0x33   : > { %1485 = dma.done.wait (%p1930_p1), [#allocation3], 64   ;;  %p1931_p0 = pmov %p1930_p1 }
  0x34   : > { %p420_p6 = scmp.lt.s32.totalorder %s1618_s25, 1  ;;  %v1509_v0 = vmov 0   ;;  %v1510_v1 = vmov 1   ;;  %v1384_v4 = vld [vmem:[%s1908_s2] sm:$0xff]   ;;  %vm463_vm0 = vcmask 130048   ;;  %v1695_v5 = vld [vmem:[%s1916_s10 + $0x8] sm:$0xff]  ;;  %v534_v30 = vlaneseq }
  0x35   : > { %1487 = vsyncadd (%p1931_p0), [#allocation3], 4294967232  ;;  %499 = vmatprep.mubr.bf16.mxu1 %v1509_v0  ;;  %1359 = vset.pattern.permute.xlu0 %v1509_v0  ;;  %v1700_v6 = vld [vmem:[%s1909_s3] sm:$0xff]  ;;  %v1511_v7 = vmov 2   ;;  %v1512_v17 = vmov 3   ;;  %v1515_v27 = vmov 4  }
  0x36   : > { %s421_s23 = scalar_select %p420_p6, %s1618_s25, 1  ;;  %1360 = vset.pattern.permute.xlu1 %v1510_v1  ;;  %903 = vmatprep.mubr.bf16.mxu0 %v1509_v0  ;;  %v1725_v26 = vld [vmem:[%s1915_s9] sm:$0xff]  ;;  %v1516_v28 = vmov 5   ;;  %v1734_v33 = vshrl.u32 %v534_v30, 7  ;;  %v1736_v35 = vand.u32 127, %v534_v30  ;;  %v1747_v39 = vld [vmem:[%s1907_s1 + $0x8] sm:$0xff] }
  0x37   : > { %445 = vperm.xlu0 %1359, %v1695_v5   ;;  %557 = vperm.xlu1 %1360, %v1700_v6   ;;  %v1742_v38 = vld [vmem:[%s1907_s1] sm:$0xff]  ;;  %v1517_v61 = vmov 6   ;;  %s1518_s16 = smov 16   ;;  %s1519_s19 = smov 112   ;;  %vm793_vm9 = vcmask 1043456   ;;  %vm789_vm10 = vcmask 64512  }
  0x38   : > { %s1279_s30 = sshll.u32 %s421_s23, 4  ;;  %s1513_s23 = smov 1   ;;  %v541_v37 = vsub.s32 0, %v1734_v33  ;;  %vm536_vm1 = vcmp.lt.s32.totalorder %v1736_v35, 1  ;;  %v573_v40 = vsub.s32 1, %v1734_v33  ;;  %vm568_vm2 = vcmp.lt.s32.totalorder %v1736_v35, 127 }
  0x39   : > { %s424_s18 = scalar_lea.vmem %s1906_s0, %s1279_s30  ;;  %s1514_s30 = smov 127   ;;  %vm600_vm3 = vcmp.lt.s32.totalorder %v1736_v35, 16  ;;  %vm631_vm4 = vcmp.lt.s32.totalorder %v1736_v35, 112  ;;  %vm662_vm5 = vcmp.lt.s32.totalorder %v1736_v35, 2  ;;  %vm693_vm6 = vcmp.lt.s32.totalorder %v1736_v35, 126 }
  0x3a   : > { %v1381_v2 = vld [vmem:[%s424_s18 + $0x4] ss:$8 sps:$4 sm:$0xff]   ;;  %v1383_v3 = vld [vmem:[%s424_s18] ss:$8 sps:$4 sm:$0xff]   ;;  %v542_v41 = vrot.slane %v1742_v38, %v541_v37  ;;  %v546_v42 = vrot.slane %v1747_v39, %v541_v37  ;;  %v574_v47 = vrot.slane %v1742_v38, %v573_v40  ;;  %v578_v48 = vrot.slane %v1747_v39, %v573_v40  ;;  %s1523_s20 = smov 2   ;;  %s1528_s15 = smov 32  }
  0x3b   : > { %467 = vmatprep.subr.bf16.mxu1 %v1381_v2  ;;  %551 = vperm.xlu0 %1359, %v1700_v6   ;;  %vm724_vm7 = vcmp.lt.s32.totalorder %v1736_v35, 32  ;;  %vm755_vm8 = vcmp.lt.s32.totalorder %v1736_v35, 96  ;;  %s417_s28 = sand.u32 1, %s1498_s22   ;;  %p1932_p9 = scmp.ne.s32.totalorder %s1925_s13, 0 }
  0x3c   : > { %468 = vmatpush1.bf16.msra.mxu1 %v1383_v3  ;;  %1361 = vset.pattern.permute.xlu1 %v1511_v7  ;;  %s1253_s29 = sshll.u32 %s417_s28, 4  ;;  %s1865_s17 = scalar_lea.sflag [#allocation4], %s417_s28 }
  0x3d   : > { %582 = vperm.xlu1 %1361, %v1700_v6  }
  0x3f   : > { %1259 = vmatmul.mubr.msk.bf16.vlgmr.msra.gmra.mrb[0].mxu1 %vm463_vm0, %v1384_v4 }
  0x40   : > { %832 = vmatprep.mubr.bf16.mxu1 %v1509_v0 }
  0x41   : > { %1362 = vset.pattern.permute.xlu1 %v1512_v17 }
  0xb6   : > { %v446_v10 = vpop.permute.xlu0 %445  ;;  %v558_v29 = vpop.permute.xlu1 %557 }
  0xba   : > { %v552_v32 = vpop.permute.xlu0 %551 }
  0xbc   : > { %v583_v31 = vpop.permute.xlu1 %582 }
 0x112   : > { %v1709_v8 = vpop.f32.mrb[0].mxu1 }
 0x113   : > { %v1711_v9 = vpop.f32.mrb[1].mxu1 }
 0x114   : > { %v505_v11 = vpop.f32.mrb[2].mxu1 }
 0x115   : > { %v506_v12 = vadd.f32 %v505_v11, %v446_v10  ;;  %v507_v13 = vpop.f32.mrb[3].mxu1 }
 0x116   : > { %v508_v14 = vadd.f32 %v507_v13, %v446_v10  ;;  %v1521_v13 = vmov 8  }
 0x117   : > { %v512_v15 = vmul.f32 0.5, %v506_v12 }
 0x118   : > { %v513_v16 = vmul.f32 0.5, %v508_v14 }
 0x119   : > { %1388 = vtanh.f32 %v512_v15 }
 0x11a   : > { %1390 = vtanh.f32 %v513_v16 }
 0x123   : > { %v1389_v18 = vpop.eup %1388 }
 0x124   : > { %v1391_v19 = vpop.eup %1390  ;;  %v520_v20 = vmul.f32 0.5, %v1389_v18 }
 0x125   : > { %v521_v21 = vmul.f32 0.5, %v1391_v19 }
 0x126   : > { %v524_v22 = vadd.f32 0.5, %v520_v20 }
 0x127   : > { %v525_v23 = vadd.f32 0.5, %v521_v21  ;;  %v605_v21 = vsub.s32 2, %v1734_v33 }
 0x128   : > { %v1714_v24 = vmul.f32 %v524_v22, %v506_v12  ;;  %v1520_v12 = vmov 7   ;;  %v636_v22 = vsub.s32 3, %v1734_v33 }
 0x129   : > { %v1716_v25 = vmul.f32 %v525_v23, %v508_v14  ;;  %v1522_v14 = vmov 9   ;;  %v610_v23 = vrot.slane %v1747_v39, %v605_v21 }
 0x12a   : > { %530 = vrot.lane.b32.xlu0 %v1714_v24, %s1513_s23  ;;  %v560_v57 = vmul.f32 %v558_v29, %v1714_v24 }
 0x12b   : > { %532 = vrot.lane.b32.xlu1 %v1716_v25, %s1513_s23  ;;  %v561_v58 = vmul.f32 %v558_v29, %v1716_v25  ;;  %s1524_s23 = smov 126  }
 0x12e   : > { %564 = vrot.lane.b32.xlu0 %v1714_v24, %s1514_s30 }
 0x12f   : > { %566 = vrot.lane.b32.xlu1 %v1716_v25, %s1514_s30  ;;  %s1527_s30 = smov 96  }
 0x132   : > { %591 = vperm.xlu0 %1359, %v1725_v26  }
 0x133   : > { %614 = vperm.xlu1 %1362, %v1700_v6  }
 0x136   : > { %1363 = vset.pattern.permute.xlu0 %v1515_v27 }
 0x137   : > { %620 = vperm.xlu0 %1363, %v1700_v6   ;;  %1364 = vset.pattern.permute.xlu1 %v1516_v28 }
 0x138   : > { %645 = vperm.xlu1 %1364, %v1700_v6  }
 0x13b   : > { %1366 = vset.pattern.permute.xlu0 %v1517_v61 }
 0x13c   : > { %1365 = vset.pattern.permute.xlu1 %v1510_v1 }
 0x19c   : > { %v531_v34 = vpop.permute.xlu0 %530 }
 0x19d   : > { %v533_v36 = vpop.permute.xlu1 %532 }
 0x19e   : > { %v537_v45 = vsel %vm536_vm1, %v531_v34, %v533_v36  ;;  %v538_v46 = vsel %vm536_vm1, %v533_v36, %v531_v34  ;;  %v637_v34 = vrot.slane %v1742_v38, %v636_v22  ;;  %v641_v36 = vrot.slane %v1747_v39, %v636_v22 }
 0x19f   : > { %v547_v51 = vmul.f32 %v542_v41, %v538_v46  ;;  %v548_v52 = vmul.f32 %v546_v42, %v537_v45 }
 0x1a0   : > { %v565_v43 = vpop.permute.xlu0 %564 }
 0x1a1   : > { %v567_v44 = vpop.permute.xlu1 %566  ;;  %v554_v55 = vmul.f32 %v552_v32, %v547_v51  ;;  %v555_v56 = vmul.f32 %v552_v32, %v548_v52 }
 0x1a2   : > { %v569_v49 = vsel %vm568_vm2, %v565_v43, %v567_v44  ;;  %v570_v50 = vsel %vm568_vm2, %v567_v44, %v565_v43 }
 0x1a3   : > { %v579_v53 = vmul.f32 %v574_v47, %v569_v49  ;;  %v580_v54 = vmul.f32 %v578_v48, %v570_v50  ;;  %v562_v62 = vadd.f32 %v560_v57, %v554_v55  ;;  %v563_v63 = vadd.f32 %v561_v58, %v555_v56 }
 0x1a4   : > { %v1525_v58 = vmov 10  }
 0x1a5   : > { %v585_v59 = vmul.f32 %v583_v31, %v579_v53  ;;  %v586_v60 = vmul.f32 %v583_v31, %v580_v54 }
 0x1a7   : > { %v587_v2 = vadd.f32 %v585_v59, %v562_v62  ;;  %v588_v3 = vadd.f32 %v586_v60, %v563_v63  ;;  %v1526_v59 = vmov 11  }
 0x1b1   : > { %v592_v4 = vpop.permute.xlu0 %591 }
 0x1b2   : > { %v594_v10 = vadd.f32 %v592_v4, %v587_v2  ;;  %v595_v11 = vadd.f32 %v592_v4, %v588_v3  ;;  %v615_v15 = vpop.permute.xlu1 %614  ;;  %v667_v3 = vsub.s32 4, %v1734_v33  ;;  %v698_v4 = vsub.s32 5, %v1734_v33 }
 0x1b4   : > { %598 = vrot.lane.b32.xlu0 %v595_v11, %s1518_s16  ;;  %596 = vrot.lane.b32.xlu1 %v594_v10, %s1518_s16  ;;  %s419_s16 = scalar_lea.vmem [#allocation5], %s1253_s29 }
 0x1b6   : > { %v621_v18 = vpop.permute.xlu0 %620 }
 0x1b7   : > { %v646_v16 = vpop.permute.xlu1 %645  ;;  %v623_v47 = vmul.f32 %v621_v18, %v594_v10  ;;  %v624_v48 = vmul.f32 %v621_v18, %v595_v11 }
 0x1b8   : > { %629 = vrot.lane.b32.xlu0 %v595_v11, %s1519_s19  ;;  %627 = vrot.lane.b32.xlu1 %v594_v10, %s1519_s19  ;;  %v668_v10 = vrot.slane %v1742_v38, %v667_v3  ;;  %s1173_s19 = sshll.u32 %s419_s16, 4  ;;  %s1858_s19 = int_to_ptr.vmem [resolvable:$true] %s1173_s19 }
 0x1b9   : > { %s1440_s18 = scalar_lea.vmem %s1858_s19, 256 }
 0x1ba   : > { %p1441_p5 = scmp.ne.s32.totalorder %s1858_s19, %s1440_s18 }
 0x1bc   : > { %653 = vperm.xlu1 %1365, %v1725_v26   ;;  %676 = vperm.xlu0 %1366, %v1700_v6   ;;  %p1442_p10 = pnand %p1441_p5, %p1932_p9 }
 0x1be   : > { %p1443_p12 = pneg %p1442_p10 }
 0x1c0   : > { %1367 = vset.pattern.permute.xlu1 %v1520_v12  ;;  %1369 = vset.pattern.permute.xlu0 %v1511_v7  ;;  %v606_v7 = vrot.slane %v1742_v38, %v605_v21 }
 0x1c1   : > { %682 = vperm.xlu1 %1367, %v1700_v6  }
 0x1c5   : > { %1368 = vset.pattern.permute.xlu1 %v1521_v13  ;;  %v672_v13 = vrot.slane %v1747_v39, %v667_v3 }
 0x1c6   : > { %707 = vperm.xlu1 %1368, %v1700_v6  }
 0x1ca   : > { %1370 = vset.pattern.permute.xlu1 %v1522_v14 }
 0x226   : > { %v599_v19 = vpop.permute.xlu0 %598  ;;  %v597_v20 = vpop.permute.xlu1 %596 }
 0x227   : > { %v601_v31 = vsel %vm600_vm3, %v597_v20, %v599_v19  ;;  %v602_v32 = vsel %vm600_vm3, %v599_v19, %v597_v20 }
 0x228   : > { %v611_v41 = vmul.f32 %v606_v7, %v602_v32  ;;  %v612_v42 = vmul.f32 %v610_v23, %v601_v31 }
 0x22a   : > { %v630_v29 = vpop.permute.xlu0 %629  ;;  %v628_v30 = vpop.permute.xlu1 %627  ;;  %v617_v45 = vmul.f32 %v615_v15, %v611_v41  ;;  %v618_v46 = vmul.f32 %v615_v15, %v612_v42 }
 0x22b   : > { %v632_v37 = vsel %vm631_vm4, %v628_v30, %v630_v29  ;;  %v633_v40 = vsel %vm631_vm4, %v630_v29, %v628_v30 }
 0x22c   : > { %v642_v43 = vmul.f32 %v637_v34, %v632_v37  ;;  %v643_v44 = vmul.f32 %v641_v36, %v633_v40  ;;  %v626_v51 = vadd.f32 %v624_v48, %v618_v46  ;;  %v625_v52 = vadd.f32 %v623_v47, %v617_v45 }
 0x22d   : > { %v729_v45 = vsub.s32 6, %v1734_v33 }
 0x22e   : > { %v648_v49 = vmul.f32 %v646_v16, %v642_v43  ;;  %v649_v50 = vmul.f32 %v646_v16, %v643_v44  ;;  %v703_v16 = vrot.slane %v1747_v39, %v698_v4  ;;  %v430_v43 = vld [vmem:[%s1916_s10] sm:$0xff] }
 0x22f   : > { %v734_v48 = vrot.slane %v1747_v39, %v729_v45 }
 0x230   : > { %v651_v53 = vadd.f32 %v649_v50, %v626_v51  ;;  %v650_v54 = vadd.f32 %v648_v49, %v625_v52  ;;  %v760_v49 = vsub.s32 7, %v1734_v33 }
 0x23b   : > { %v654_v55 = vpop.permute.xlu1 %653  ;;  %v677_v61 = vpop.permute.xlu0 %676 }
 0x23c   : > { %v656_v56 = vadd.f32 %v654_v55, %v650_v54  ;;  %v657_v57 = vadd.f32 %v654_v55, %v651_v53  ;;  %v761_v53 = vrot.slane %v1742_v38, %v760_v49  ;;  %v765_v54 = vrot.slane %v1747_v39, %v760_v49 }
 0x23e   : > { %660 = vrot.lane.b32.xlu1 %v657_v57, %s1523_s20  ;;  %658 = vrot.lane.b32.xlu0 %v656_v56, %s1523_s20  ;;  %s1282_s20 = sshll.u32 %s1618_s25, 8  ;;  %s1529_s25 = smov [#allocation5]  }
 0x23f   : > { %s1444_s26 = sshll.u32 %s1529_s25, 4  ;;  %s1445_s26 = int_to_ptr.vmem [resolvable:$false] %s1444_s26 }
 0x240   : > { %v683_v60 = vpop.permute.xlu1 %682  ;;  %s1446_s29 = scalar_lea.vmem %s1445_s26, 512  ;;  %p1447_p2 = scmp.lt.s32.totalorder %s1858_s19, %s1445_s26 }
 0x241   : > { %v685_v22 = vmul.f32 %v683_v60, %v656_v56  ;;  %v686_v31 = vmul.f32 %v683_v60, %v657_v57  ;;  %p1448_p3 = scmp.lt.s32.totalorder %s1446_s29, %s1440_s18 }
 0x242   : > { %691 = vrot.lane.b32.xlu1 %v657_v57, %s1524_s23  ;;  %689 = vrot.lane.b32.xlu0 %v656_v56, %s1524_s23 }
 0x243   : > { %p1449_p4 = por %p1448_p3, %p1447_p2 }
 0x245   : > { %v708_v62 = vpop.permute.xlu1 %707  ;;  %p1450_p7 = pnand %p1449_p4, %p1443_p12 }
 0x246   : > { %738 = vperm.xlu1 %1370, %v1700_v6   ;;  %715 = vperm.xlu0 %1369, %v1725_v26  }
 0x24a   : > { %1371 = vset.pattern.permute.xlu1 %v1525_v58  ;;  %1372 = vset.pattern.permute.xlu0 %v1526_v59 }
 0x24b   : > { %744 = vperm.xlu1 %1371, %v1700_v6   ;;  %769 = vperm.xlu0 %1372, %v1700_v6  }
 0x24f   : > { %1373 = vset.pattern.permute.xlu0 %v1512_v17  ;;  %1374 = vset.pattern.permute.xlu1 %v1515_v27  ;;  %v699_v27 = vrot.slane %v1742_v38, %v698_v4 }
 0x2b0   : > { %v661_v63 = vpop.permute.xlu1 %660  ;;  %v659_v2 = vpop.permute.xlu0 %658 }
 0x2b1   : > { %v664_v17 = vsel %vm662_vm5, %v661_v63, %v659_v2  ;;  %v663_v15 = vsel %vm662_vm5, %v659_v2, %v661_v63 }
 0x2b2   : > { %v673_v14 = vmul.f32 %v668_v10, %v664_v17  ;;  %v674_v20 = vmul.f32 %v672_v13, %v663_v15  ;;  %v782_v13 = vld [vmem:[#allocation2] sm:$0xf] }
 0x2b4   : > { %v692_v11 = vpop.permute.xlu1 %691  ;;  %v690_v6 = vpop.permute.xlu0 %689  ;;  %v679_v21 = vmul.f32 %v677_v61, %v673_v14  ;;  %v680_v29 = vmul.f32 %v677_v61, %v674_v20 }
 0x2b5   : > { %v694_v12 = vsel %vm693_vm6, %v690_v6, %v692_v11  ;;  %v695_v19 = vsel %vm693_vm6, %v692_v11, %v690_v6 }
 0x2b6   : > { %v704_v18 = vmul.f32 %v699_v27, %v694_v12  ;;  %v705_v7 = vmul.f32 %v703_v16, %v695_v19  ;;  %v687_v30 = vadd.f32 %v685_v22, %v679_v21  ;;  %v688_v37 = vadd.f32 %v686_v31, %v680_v29 }
 0x2b8   : > { %v710_v23 = vmul.f32 %v708_v62, %v704_v18  ;;  %v711_v32 = vmul.f32 %v708_v62, %v705_v7 }
 0x2ba   : > { %v712_v34 = vadd.f32 %v710_v23, %v687_v30  ;;  %v713_v41 = vadd.f32 %v711_v32, %v688_v37 }
 0x2c5   : > { %v716_v36 = vpop.permute.xlu0 %715 }
 0x2c6   : > { %v718_v40 = vadd.f32 %v716_v36, %v712_v34  ;;  %v719_v42 = vadd.f32 %v716_v36, %v713_v41  ;;  %v1385_v34 = vld [vmem:[%s1911_s5] sm:$0xff]  }
 0x2c8   : > { %751 = vrot.lane.b32.xlu0 %v718_v40, %s1527_s30  ;;  %720 = vrot.lane.b32.xlu1 %v718_v40, %s1528_s15 }
 0x2ca   : > { %v770_v47 = vpop.permute.xlu0 %769 }
 0x2cc   : > { %777 = vperm.xlu0 %1373, %v1725_v26   ;;  %722 = vrot.lane.b32.xlu1 %v719_v42, %s1528_s15  ;;  %s1863_s15 = scalar_lea.hbm %s1918_s12, %s1282_s20 }
 0x2d0   : > { %753 = vrot.lane.b32.xlu1 %v719_v42, %s1527_s30  ;;  %1376 = vset.pattern.permute.xlu0 %v1510_v1 }
 0x2d1   : > { %854 = vperm.xlu0 %1376, %v1695_v5   ;;  %v739_v5 = vpop.permute.xlu1 %738 }
 0x2d4   : > { %786 = vperm.xlu1 %1374, %v1725_v26  }
 0x2d5   : > { %1379 = vset.pattern.permute.xlu0 %v1509_v0  ;;  %v745_v44 = vpop.permute.xlu1 %744 }
 0x2d6   : > { %v747_v33 = vmul.f32 %v745_v44, %v718_v40  ;;  %v748_v63 = vmul.f32 %v745_v44, %v719_v42 }
 0x2d8   : > { %1375 = vset.pattern.permute.xlu1 %v1510_v1  ;;  %v730_v1 = vrot.slane %v1742_v38, %v729_v45 }
 0x2d9   : > { %850 = vperm.xlu1 %1375, %v430_v43  }
 0x2dd   : > { %1377 = vset.pattern.permute.xlu1 %v1509_v0 }
 0x2de   : > { %440 = vperm.xlu1 %1377, %v430_v43  }
 0x2e2   : > { %1378 = vset.pattern.permute.xlu1 %v1516_v28 }
 0x2e3   : > { %984 = vperm.xlu1 %1378, %v1725_v26  }
 0x2e7   : > { %1380 = vset.pattern.permute.xlu1 %v1509_v0 }
 0x33a   : > { %v721_v46 = vpop.permute.xlu1 %720  ;;  %v752_v55 = vpop.permute.xlu0 %751 }
 0x33e   : > { %v723_v50 = vpop.permute.xlu1 %722 }
 0x33f   : > { %v725_v28 = vsel %vm724_vm7, %v721_v46, %v723_v50  ;;  %v726_v51 = vsel %vm724_vm7, %v723_v50, %v721_v46 }
 0x340   : > { %v735_v26 = vmul.f32 %v730_v1, %v726_v51  ;;  %v736_v52 = vmul.f32 %v734_v48, %v725_v28 }
 0x342   : > { %v754_v56 = vpop.permute.xlu1 %753  ;;  %v741_v59 = vmul.f32 %v739_v5, %v735_v26  ;;  %v742_v60 = vmul.f32 %v739_v5, %v736_v52 }
 0x343   : > { %v756_v57 = vsel %vm755_vm8, %v752_v55, %v754_v56  ;;  %v757_v58 = vsel %vm755_vm8, %v754_v56, %v752_v55 }
 0x344   : > { %v766_v61 = vmul.f32 %v761_v53, %v756_v57  ;;  %v767_v62 = vmul.f32 %v765_v54, %v757_v58  ;;  %v749_v4 = vadd.f32 %v747_v33, %v741_v59  ;;  %v750_v35 = vadd.f32 %v748_v63, %v742_v60  ;;  %v934_v63 = vld [vmem:[%s1912_s6] sm:$0xf] }
 0x346   : > { %v772_v2 = vmul.f32 %v770_v47, %v766_v61  ;;  %v773_v3 = vmul.f32 %v770_v47, %v767_v62 }
 0x348   : > { %v774_v10 = vadd.f32 %v772_v2, %v749_v4  ;;  %v775_v11 = vadd.f32 %v773_v3, %v750_v35  ;;  %v432_v2 = vld [vmem:[%s1917_s11] sm:$0xff]  ;;  %v433_v3 = vld [vmem:[%s1917_s11 + $0x8] sm:$0xff] }
 0x349   : > { %1113 = vperm.xlu0 %1379, %v432_v2   ;;  %1118 = vperm.xlu1 %1380, %v433_v3  }
 0x34b   : > { %v778_v6 = vpop.permute.xlu0 %777 }
 0x34c   : > { %v780_v38 = vadd.f32 %v778_v6, %v774_v10  ;;  %v781_v17 = vadd.f32 %v778_v6, %v775_v11 }
 0x34e   : > { %v783_v39 = vpack.c.bf16 %v780_v38, %v780_v38  ;;  %v784_v27 = vpack.c.bf16 %v781_v17, %v781_v17 }
 0x350   : > { %1260 = vmatprep.subr.msk.bf16.mxu1 %vm793_vm9, %v784_v27  ;;  %v795_v12 = vsel %vm793_vm9, %v783_v39, 0  ;;  %v855_v36 = vpop.permute.xlu0 %854 }
 0x351   : > { %801 = vmatpush1.bf16.msra.mxu1 %v795_v12 }
 0x353   : > { %v787_v14 = vpop.permute.xlu1 %786 }
 0x354   : > { %1261 = vmatmul.mubr.msk.bf16.vlgmr.msra.gmra.mrb[4].mxu1 %vm789_vm10, %v782_v13 }
 0x355   : > { %972 = vmatprep.mubr.bf16.mxu1 %v1509_v0 }
 0x427   : > { %v834_v15 = vpop.f32.mrb[4].mxu1 }
 0x428   : > { %v835_v16 = vadd.f32 %v834_v15, %v787_v14  ;;  %v836_v18 = vpop.f32.mrb[5].mxu1 }
 0x429   : > { %v837_v19 = vadd.f32 %v836_v18, %v787_v14  ;;  %v838_v20 = vpop.f32.mrb[6].mxu1 }
 0x42a   : > { %v841_v21 = vmul.f32 %v835_v16, %v1714_v24  ;;  %v839_v22 = vpop.f32.mrb[7].mxu1 }
 0x42b   : > { %v842_v7 = vmul.f32 %v837_v19, %v1716_v25 }
 0x42c   : > { %v1813_v23 = vadd.f32 %v841_v21, %v1714_v24  ;;  %v851_v24 = vpop.permute.xlu1 %850 }
 0x42d   : > { %v1816_v29 = vadd.f32 %v842_v7, %v1716_v25 }
 0x42e   : > { %v847_v30 = vpack.c.bf16 %v1813_v23, %v1813_v23 }
 0x42f   : > { %v848_v31 = vpack.c.bf16 %v1816_v29, %v1816_v29 }
 0x430   : > { %v866_v32 = vsel %vm793_vm9, %v847_v30, 0  ;;  %v441_v4 = vpop.permute.xlu1 %440 }
 0x431   : > { %1263 = vmatprep.subr.msk.bf16.mxu0 %vm793_vm9, %v848_v31  ;;  %v502_v35 = vadd.f32 %v1709_v8, %v441_v4  ;;  %v504_v10 = vadd.f32 %v1711_v9, %v441_v4 }
 0x432   : > { %872 = vmatpush1.bf16.msra.mxu0 %v866_v32 }
 0x433   : > { %v510_v11 = vmul.f32 0.5, %v502_v35  ;;  %v511_v6 = vmul.f32 0.5, %v504_v10 }
 0x434   : > { %v985_v15 = vpop.permute.xlu1 %984 }
 0x435   : > { %1264 = vmatmul.mubr.msk.bf16.vlgmr.msra.gmra.mrb[0].mxu0 %vm789_vm10, %v1385_v34 }
 0x436   : > { %1043 = vmatprep.mubr.bf16.mxu0 %v1509_v0 }
 0x508   : > { %v905_v25 = vpop.f32.mrb[0].mxu0 }
 0x509   : > { %v906_v37 = vadd.f32 %v905_v25, %v851_v24  ;;  %v907_v40 = vpop.f32.mrb[1].mxu0  ;;  %v1387_v25 = vld [vmem:[%s1913_s7] sm:$0xff]  }
 0x50a   : > { %v908_v41 = vadd.f32 %v907_v40, %v851_v24  ;;  %v909_v42 = vpop.f32.mrb[2].mxu0  ;;  %v1119_v40 = vpop.permute.xlu1 %1118 }
 0x50b   : > { %v914_v43 = vmul.f32 0.5, %v906_v37  ;;  %v910_v5 = vadd.f32 %v909_v42, %v855_v36  ;;  %v911_v44 = vpop.f32.mrb[3].mxu0 }
 0x50c   : > { %v915_v45 = vmul.f32 0.5, %v908_v41  ;;  %v912_v46 = vadd.f32 %v911_v44, %v855_v36  ;;  %v1114_v36 = vpop.permute.xlu0 %1113 }
 0x50d   : > { %1392 = vtanh.f32 %v914_v43  ;;  %v916_v47 = vmul.f32 0.5, %v910_v5 }
 0x50e   : > { %1394 = vtanh.f32 %v915_v45  ;;  %v917_v1 = vmul.f32 0.5, %v912_v46 }
 0x50f   : > { %1396 = vtanh.f32 %v916_v47 }
 0x510   : > { %1398 = vtanh.f32 %v917_v1 }
 0x511   : > { %1400 = vtanh.f32 %v510_v11 }
 0x512   : > { %1402 = vtanh.f32 %v511_v6 }
 0x517   : > { %v1393_v48 = vpop.eup %1392 }
 0x518   : > { %v1395_v49 = vpop.eup %1394  ;;  %v922_v50 = vmul.f32 0.5, %v1393_v48 }
 0x519   : > { %v1397_v28 = vpop.eup %1396  ;;  %v923_v51 = vmul.f32 0.5, %v1395_v49 }
 0x51a   : > { %v1399_v26 = vpop.eup %1398  ;;  %v926_v52 = vadd.f32 0.5, %v922_v50  ;;  %v924_v53 = vmul.f32 0.5, %v1397_v28 }
 0x51b   : > { %v927_v54 = vadd.f32 0.5, %v923_v51  ;;  %v925_v55 = vmul.f32 0.5, %v1399_v26  ;;  %v1401_v38 = vpop.eup %1400 }
 0x51c   : > { %v928_v56 = vadd.f32 0.5, %v924_v53  ;;  %v930_v58 = vmul.f32 %v926_v52, %v906_v37  ;;  %v1403_v17 = vpop.eup %1402  ;;  %v518_v39 = vmul.f32 0.5, %v1401_v38 }
 0x51d   : > { %v929_v57 = vadd.f32 0.5, %v925_v55  ;;  %v931_v60 = vmul.f32 %v927_v54, %v908_v41  ;;  %v519_v27 = vmul.f32 0.5, %v1403_v17 }
 0x51e   : > { %v932_v59 = vmul.f32 %v928_v56, %v910_v5  ;;  %v522_v12 = vadd.f32 0.5, %v518_v39 }
 0x51f   : > { %v933_v61 = vmul.f32 %v929_v57, %v912_v46  ;;  %v523_v13 = vadd.f32 0.5, %v519_v27 }
 0x520   : > { %v935_v62 = vpack.c.bf16 %v932_v59, %v930_v58  ;;  %v526_v21 = vmul.f32 %v522_v12, %v502_v35 }
 0x521   : > { %v936_v33 = vpack.c.bf16 %v933_v61, %v931_v60  ;;  %v527_v22 = vmul.f32 %v523_v13, %v504_v10 }
 0x522   : > { %v991_v34 = vpack.c.bf16 %v526_v21, %v526_v21 }
 0x523   : > { %940 = vmatprep.subr.bf16.mxu1 %v936_v33  ;;  %v992_v24 = vpack.c.bf16 %v527_v22, %v527_v22 }
 0x524   : > { %941 = vmatpush1.bf16.msra.mxu1 %v935_v62 }
 0x527   : > { %1265 = vmatmul.mubr.msk.bf16.vlgmr.msra.gmra.mrb[8].mxu1 %vm463_vm0, %v934_v63 }
 0x5fa   : > { %v974_v14 = vpop.f32.mrb[8].mxu1 }
 0x5fb   : > { %v981_v16 = vadd.f32 %v974_v14, %v1813_v23  ;;  %v976_v18 = vpop.f32.mrb[9].mxu1  ;;  %v1386_v23 = vld [vmem:[%s1914_s8] sm:$0xff]  }
 0x5fc   : > { %v982_v19 = vadd.f32 %v976_v18, %v1816_v29  ;;  %v978_v8 = vpop.f32.mrb[10].mxu1  ;;  %v1063_v29 = vsel %vm793_vm9, %v991_v34, 0 }
 0x5fd   : > { %v987_v20 = vadd.f32 %v985_v15, %v981_v16  ;;  %v979_v9 = vpop.f32.mrb[11].mxu1 }
 0x5fe   : > { %v988_v7 = vadd.f32 %v985_v15, %v982_v19 }
 0x5ff   : > { %v995_v30 = vpack.c.bf16 %v987_v20, %v987_v20 }
 0x600   : > { %v996_v31 = vpack.c.bf16 %v988_v7, %v988_v7 }
 0x601   : > { %v1006_v32 = vsel %vm793_vm9, %v995_v30, 0 }
 0x602   : > { %1267 = vmatprep.subr.msk.bf16.mxu0 %vm793_vm9, %v996_v31 }
 0x603   : > { %1012 = vmatpush1.bf16.msra.mxu0 %v1006_v32 }
 0x604   : > { %1270 = vmatprep.subr.msk.bf16.mxu0 %vm793_vm9, %v992_v24 }
 0x606   : > { %1268 = vmatmul.mubr.msk.bf16.vlgmr.msra.gmra.mrb[4].mxu0 %vm789_vm10, %v1386_v23 }
 0x607   : > { %1069 = vmatpush1.bf16.msra.mxu0 %v1063_v29  ;;  %1100 = vmatprep.mubr.bf16.mxu0 %v1509_v0 }
 0x612   : > { %1271 = vmatmul.mubr.msk.bf16.vlgmr.msra.gmra.mrb[4].mxu0 %vm789_vm10, %v1387_v25 }
 0x6e5   : > { %v1102_v37 = vpop.f32.mrb[4].mxu0 }
 0x6e6   : > { %v1121_v41 = vadd.f32 %v1114_v36, %v1102_v37  ;;  %v1104_v42 = vpop.f32.mrb[5].mxu0 }
 0x6e7   : > { %v1122_v43 = vadd.f32 %v1114_v36, %v1104_v42  ;;  %v1106_v5 = vpop.f32.mrb[6].mxu0 }
 0x6e8   : > { %v1125_v44 = vmul.f32 0.5, %v1121_v41  ;;  %v1123_v45 = vadd.f32 %v1119_v40, %v1106_v5  ;;  %v1108_v46 = vpop.f32.mrb[7].mxu0 }
 0x6e9   : > { %v1126_v47 = vmul.f32 0.5, %v1122_v43  ;;  %v1124_v1 = vadd.f32 %v1119_v40, %v1108_v46 }
 0x6ea   : > { %1404 = vtanh.f32 %v1125_v44  ;;  %v1127_v0 = vmul.f32 0.5, %v1123_v45 }
 0x6eb   : > { %1406 = vtanh.f32 %v1126_v47  ;;  %v1128_v48 = vmul.f32 0.5, %v1124_v1 }
 0x6ec   : > { %1408 = vtanh.f32 %v1127_v0 }
 0x6ed   : > { %1410 = vtanh.f32 %v1128_v48 }
 0x6f4   : > { %v1405_v49 = vpop.eup %1404 }
 0x6f5   : > { %v1407_v50 = vpop.eup %1406  ;;  %v1133_v28 = vmul.f32 0.5, %v1405_v49 }
 0x6f6   : > { %v1409_v51 = vpop.eup %1408  ;;  %v1134_v26 = vmul.f32 0.5, %v1407_v50 }
 0x6f7   : > { %v1411_v52 = vpop.eup %1410  ;;  %v1137_v53 = vadd.f32 0.5, %v1133_v28  ;;  %v1135_v54 = vmul.f32 0.5, %v1409_v51 }
 0x6f8   : > { %v1138_v55 = vadd.f32 0.5, %v1134_v26  ;;  %v1136_v56 = vmul.f32 0.5, %v1411_v52 }
 0x6f9   : > { %v1141_v57 = vmul.f32 %v1137_v53, %v1121_v41  ;;  %v1139_v58 = vadd.f32 0.5, %v1135_v54 }
 0x6fa   : > { %v1142_v59 = vmul.f32 %v1138_v55, %v1122_v43  ;;  %v1140_v60 = vadd.f32 0.5, %v1136_v56 }
 0x6fb   : > { %v1143_v61 = vmul.f32 %v1139_v58, %v1123_v45 }
 0x6fc   : > { %v1280_v62 = vpack.c.bf16 %v1142_v59, %v1141_v57  ;;  %v1144_v33 = vmul.f32 %v1140_v60, %v1124_v1 }
 0x6fe   : > { %1157 = vst [vmem:[%s419_s16] sm:$0xff] %v1280_v62  ;;  %v1281_v63 = vpack.c.bf16 %v1144_v33, %v1143_v61 }
 0x700   : > { %1158 = vst [vmem:[%s419_s16 + $0x8] sm:$0xff] %v1281_v63 }
 0x701   : > { %1453 = shalt.err (!%p1450_p7)
}
 0x702   : > { %s1454_s28 = scalar_lea.hbm %s1863_s15, 256  ;;  %s1458_s23 = scalar_lea.hbm %s1918_s12, 512 }
 0x703   : > { %p1455_p8 = scmp.ne.s32.totalorder %s1863_s15, %s1454_s28  ;;  %p1459_p1 = scmp.lt.u32.totalorder %s1863_s15, %s1918_s12 }
 0x704   : > { %p1460_p0 = scmp.lt.u32.totalorder %s1458_s23, %s1454_s28  ;;  %p1462_p5 = scmp.lt.u32.totalorder %s1454_s28, %s1863_s15 }
 0x705   : > { %p1456_p11 = pnand %p1455_p8, %p1932_p9 }
 0x706   : > { %p1461_p6 = por %p1460_p0, %p1459_p1 }
 0x707   : > { %p1457_p13 = pneg %p1456_p11 }
 0x708   : > { %p1463_p10 = por %p1462_p5, %p1461_p6 }
 0x70a   : > { %p1464_p12 = pnand %p1463_p10, %p1457_p13 }
 0x70c   : > { %1467 = shalt.err (!%p1464_p12)
}
 0x70d   : > { %s1530_s18 = smov 128   ;;  %s1531_s26 = smov 8  }
 0x70e   : > { %1291 = dma.vmem_to_hbm [thread:$0]  (%p1932_p9), %s1858_s19, 256, %s1863_s15, %s1865_s17, %s1530_s18, %s1530_s18, %s1531_s26  }
 0x70f PF: > { %p1303_p2 = scmp.ge.s32.totalorder %s1506_s24, 2  ;;  %s1188_s29 = sand.u32 1, %s1494_s21  }
 0x710   : > { %p1933_p3 = scmp.ne.s32.totalorder %s1926_s14, 0  ;;  %s1189_s28 = scalar_lea.sflag [#allocation4], %s1188_s29 }
 0x712   : > { %p1298_p4 = pnand %p1303_p2, %p1933_p3 }
 0x714   : > { %1489 = dma.done.wait (!%p1298_p4), %s1189_s28, 256  }
 0x715   : > { %1491 = vsyncadd (!%p1298_p4), %s1189_s28, 4294967040  ;;  %s1934_s16 = sld [smem:[#allocation8_spill]]  ;;  %s1935_s23 = sld [smem:[#allocation9_spill]] }
 0x716   : > { %p23_p7 = scmp.ge.s32.totalorder %s1622_s27, 4   ;;  %s1936_s21 = smov %s1498_s22 }
 0x717   : > { %s1938_s24 = smov %s1622_s27 }
 0x718   :  { %25 = sbr.rel (!%p23_p7) target bundleno = 4 (0x4), region = 108 }
 0x71b   : > { %s1937_s22 = smov %s1934_s16 }
 0x71f   :  { %1194 = vsyncpa [#allocation3], 1 }
 0x720   :  { %1196 = vsyncpa [#allocation3 + $0x1], 1 }
 0x721   :  { %1197 = vsyncpa [#allocation4], 1 }
 0x722   :  { %1199 = vsyncpa [#allocation4 + $0x1], 1 }

</bundles_post_ra>
